<compile_context>
chip_gen: v7x
topology: tpu7x:2x2x1
jax: 0.10.0
libtpu: 0.0.40
codegen_flags: <defaults>
</compile_context>

<pallas_src>
import jax
import jax.numpy as jnp
from jax import lax
from jax.experimental import pallas as pl
from jax.experimental.pallas import tpu as pltpu

AA_ALPHABET = "ACDEFGHIKLMNPQRSTVWY"   # 20 standard amino acids
PAD_IDX = len(AA_ALPHABET)             # 20
VOCAB = len(AA_ALPHABET) + 1           # 21
EMBED_DIM = 16
HIDDEN_DIM = 32


def _round_up(x, m):
    return ((x + m - 1) // m) * m


def _classifier_kernel(tcr_ref, pmhc_ref, inv_t_ref, inv_p_ref,
                       emb_ref, w1t_t_ref, w1t_p_ref, b1_ref, w2t_ref,
                       b2_ref, out_ref):
    f32 = jnp.float32
    emb = emb_ref[...]                              # (V, E)

    def pooled(tok_ref, inv_ref):
        # Masked mean-pool via a token histogram:
        #   sum_l valid * emb[tok[:, l]] == counts @ emb   (lookup is linear)
        # Column-by-column accumulation keeps only (TB, V) live (no (B,L,V)
        # one-hot, no cross-sublane reduction).
        tok = tok_ref[...]                          # (TB, L) int32
        tb, seq_len = tok.shape
        lane_iota = lax.broadcasted_iota(jnp.int32, (tb, VOCAB), 1)
        vocab_mask = lane_iota != PAD_IDX           # zero out the padding lane
        counts = jnp.zeros((tb, VOCAB), f32)
        for l in range(seq_len):                    # static unroll; L is tiny
            hit = (tok[:, l:l + 1] == lane_iota) & vocab_mask
            counts = counts + hit.astype(f32)
        summed = jnp.dot(counts, emb, preferred_element_type=f32)  # (TB, E)
        return summed * inv_ref[...]                # masked mean (1/len precomputed)

    t = pooled(tcr_ref, inv_t_ref)                  # (TB, E)
    p = pooled(pmhc_ref, inv_p_ref)                 # (TB, E)

    # fc1 on the implicit concat [t, p]: W1 split into halves -> no lane concat.
    h = (jnp.dot(t, w1t_t_ref[...], preferred_element_type=f32)
         + jnp.dot(p, w1t_p_ref[...], preferred_element_type=f32)
         + b1_ref[...])
    h = jnp.maximum(h, 0.0)                         # ReLU
    y = jnp.dot(h, w2t_ref[...], preferred_element_type=f32) + b2_ref[0, 0]
    out_ref[...] = y                                # (TB, 1)


def sequence_pair_classifier(tcr, tcr_len, pmhc, pmhc_len, params, *,
                             block_b=256):
    """Mirrors SequencePairClassifier.forward.  tcr_len / pmhc_len are accepted
    for API parity but unused: the mask is derived from pad_idx, exactly as in
    the PyTorch forward."""
    del tcr_len, pmhc_len
    emb = jnp.asarray(params["embed"], jnp.float32)          # (V, E)
    w1 = jnp.asarray(params["fc1_w"], jnp.float32)           # (H, 2E) torch layout
    b1 = jnp.asarray(params["fc1_b"], jnp.float32)           # (H,)
    w2 = jnp.asarray(params["fc2_w"], jnp.float32)           # (1, H)
    b2 = jnp.asarray(params["fc2_b"], jnp.float32)           # (1,)

    B, LT = tcr.shape
    _, LP = pmhc.shape

    # Batch tiling: TB rows per grid step (multiple of 8 sublanes), pad B up.
    tb = min(block_b, _round_up(B, 8))
    bp = _round_up(B, tb)
    tcr = tcr.astype(jnp.int32)
    pmhc = pmhc.astype(jnp.int32)
    if bp != B:
        tcr = jnp.pad(tcr, ((0, bp - B), (0, 0)), constant_values=PAD_IDX)
        pmhc = jnp.pad(pmhc, ((0, bp - B), (0, 0)), constant_values=PAD_IDX)

    # Inverse valid-token counts (normalization), computed once outside the
    # kernel so the kernel only multiplies. The `where` guards the padded rows
    # (all-pad real rows would be 0/0 in the PyTorch reference too).
    cnt_t = jnp.sum(tcr != PAD_IDX, axis=1, keepdims=True).astype(jnp.float32)
    cnt_p = jnp.sum(pmhc != PAD_IDX, axis=1, keepdims=True).astype(jnp.float32)
    inv_t = jnp.where(cnt_t > 0, 1.0 / cnt_t, 0.0)
    inv_p = jnp.where(cnt_p > 0, 1.0 / cnt_p, 0.0)

    # Torch (out, in) weights -> (in, out); split W1 into its tcr/pmhc halves.
    w1t = w1.T                                    # (2E, H)
    w1t_t = w1t[:EMBED_DIM]                       # (E, H)  — tcr half
    w1t_p = w1t[EMBED_DIM:]                       # (E, H)  — pmhc half
    b1r = b1.reshape(1, HIDDEN_DIM)
    w2t = w2.T                                    # (H, 1)
    b2r = b2.reshape(1, 1)

    n_blocks = bp // tb
    batch_blk = lambda shape: pl.BlockSpec(shape, lambda i: (i, 0))
    resident = lambda shape: pl.BlockSpec(shape, lambda i: (0, 0))

    out = pl.pallas_call(
        _classifier_kernel,
        out_shape=jax.ShapeDtypeStruct((bp, 1), jnp.float32),
        grid=(n_blocks,),
        in_specs=[
            batch_blk((tb, LT)),                        # tcr tokens
            batch_blk((tb, LP)),                        # pmhc tokens
            batch_blk((tb, 1)),                         # 1/len tcr
            batch_blk((tb, 1)),                         # 1/len pmhc
            resident((VOCAB, EMBED_DIM)),               # embedding table
            resident((EMBED_DIM, HIDDEN_DIM)),          # W1 (tcr half)
            resident((EMBED_DIM, HIDDEN_DIM)),          # W1 (pmhc half)
            resident((1, HIDDEN_DIM)),                  # b1
            resident((HIDDEN_DIM, 1)),                  # W2
            pl.BlockSpec(memory_space=pltpu.MemorySpace.SMEM),  # b2 scalar
        ],
        out_specs=batch_blk((tb, 1)),
        compiler_params=pltpu.CompilerParams(
            dimension_semantics=("parallel",)),         # megacore on v7x
    )(tcr, pmhc, inv_t, inv_p, emb, w1t_t, w1t_p, b1r, w2t, b2r)
    return out[:B, 0]                                   # squeeze(1)


def init_params(key):
    k_emb, k_w1, k_b1, k_w2, k_b2 = jax.random.split(key, 5)
    embed = jax.random.normal(k_emb, (VOCAB, EMBED_DIM), jnp.float32)
    embed = embed.at[PAD_IDX].set(0.0)             # padding_idx row = 0
    in1 = EMBED_DIM * 2
    bound1 = 1.0 / jnp.sqrt(in1)
    fc1_w = jax.random.uniform(k_w1, (HIDDEN_DIM, in1), jnp.float32, -bound1, bound1)
    fc1_b = jax.random.uniform(k_b1, (HIDDEN_DIM,), jnp.float32, -bound1, bound1)
    bound2 = 1.0 / jnp.sqrt(HIDDEN_DIM)
    fc2_w = jax.random.uniform(k_w2, (1, HIDDEN_DIM), jnp.float32, -bound2, bound2)
    fc2_b = jax.random.uniform(k_b2, (1,), jnp.float32, -bound2, bound2)
    return dict(embed=embed, fc1_w=fc1_w, fc1_b=fc1_b, fc2_w=fc2_w, fc2_b=fc2_b)


def reference_forward(tcr, pmhc, params):
    emb_t = params["embed"][tcr] * (tcr != PAD_IDX)[..., None]
    emb_p = params["embed"][pmhc] * (pmhc != PAD_IDX)[..., None]
    t = emb_t.sum(1) / (tcr != PAD_IDX).sum(1, keepdims=True)
    p = emb_p.sum(1) / (pmhc != PAD_IDX).sum(1, keepdims=True)
    x = jnp.concatenate([t, p], axis=1)
    h = jnp.maximum(x @ params["fc1_w"].T + params["fc1_b"], 0.0)
    return (h @ params["fc2_w"].T + params["fc2_b"])[:, 0]


if __name__ == "__main__":
    key = jax.random.PRNGKey(0)
    k_par, k_tcr, k_pmhc = jax.random.split(key, 3)
    params = init_params(k_par)

    B, LT, LP = 2, 9, 8
    tcr_len = jnp.array([9, 6], jnp.int32)
    pmhc_len = jnp.array([8, 5], jnp.int32)
    tcr = jax.random.randint(k_tcr, (B, LT), 0, len(AA_ALPHABET), jnp.int32)
    pmhc = jax.random.randint(k_pmhc, (B, LP), 0, len(AA_ALPHABET), jnp.int32)
    # pad tails with pad_idx according to lengths
    tcr = jnp.where(jnp.arange(LT)[None, :] < tcr_len[:, None], tcr, PAD_IDX)
    pmhc = jnp.where(jnp.arange(LP)[None, :] < pmhc_len[:, None], pmhc, PAD_IDX)

    out = sequence_pair_classifier(tcr, tcr_len, pmhc, pmhc_len, params)
    out = jax.block_until_ready(out)

    ref = reference_forward(tcr, pmhc, params)
    assert out.shape == (B,)
    assert jnp.allclose(out, ref, rtol=1e-5, atol=1e-5), (out, ref)
    print("KERNEL_OK")
</pallas_src>

<mosaic_0001>
module attributes {stable_mosaic.version = 11 : i64} {
  func.func @_classifier_kernel(%arg0: i32, %arg1: memref<8x9xi32, #tpu.memory_space<vmem>>, %arg2: memref<8x8xi32, #tpu.memory_space<vmem>>, %arg3: memref<8x1xf32, #tpu.memory_space<vmem>>, %arg4: memref<8x1xf32, #tpu.memory_space<vmem>>, %arg5: memref<21x16xf32, #tpu.memory_space<vmem>>, %arg6: memref<16x32xf32, #tpu.memory_space<vmem>>, %arg7: memref<16x32xf32, #tpu.memory_space<vmem>>, %arg8: memref<1x32xf32, #tpu.memory_space<vmem>>, %arg9: memref<32x1xf32, #tpu.memory_space<vmem>>, %arg10: memref<1x1xf32, #tpu.memory_space<smem>>, %arg11: memref<8x1xf32, #tpu.memory_space<vmem>>) attributes {dimension_semantics = [#tpu.dimension_semantics<parallel>], iteration_bounds = array<i64: 1>, scalar_prefetch = 0 : i64, scratch_operands = 0 : i64, tpu.core_type = #tpu.core_type<tc>, window_params = [{transform_indices = @transform_0, window_bounds = array<i64: 8, 9>}, {transform_indices = @transform_1, window_bounds = array<i64: 8, 8>}, {transform_indices = @transform_2, window_bounds = array<i64: 8, 1>}, {transform_indices = @transform_3, window_bounds = array<i64: 8, 1>}, {pipeline_mode = #tpu.pipeline_mode<synchronous>, transform_indices = @transform_4, window_bounds = array<i64: 21, 16>}, {pipeline_mode = #tpu.pipeline_mode<synchronous>, transform_indices = @transform_5, window_bounds = array<i64: 16, 32>}, {pipeline_mode = #tpu.pipeline_mode<synchronous>, transform_indices = @transform_6, window_bounds = array<i64: 16, 32>}, {pipeline_mode = #tpu.pipeline_mode<synchronous>, transform_indices = @transform_7, window_bounds = array<i64: 1, 32>}, {pipeline_mode = #tpu.pipeline_mode<synchronous>, transform_indices = @transform_8, window_bounds = array<i64: 32, 1>}, {transform_indices = @transform_9, window_bounds = array<i64: 1, 1>}, {transform_indices = @transform_10, window_bounds = array<i64: 8, 1>}]} {
    %c0 = arith.constant 0 : index
    %c0_0 = arith.constant 0 : index
    %0 = vector.load %arg5[%c0, %c0_0] : memref<21x16xf32, #tpu.memory_space<vmem>>, vector<21x16xf32>
    %c0_1 = arith.constant 0 : index
    %c0_2 = arith.constant 0 : index
    %1 = vector.load %arg1[%c0_1, %c0_2] : memref<8x9xi32, #tpu.memory_space<vmem>>, vector<8x9xi32>
    %2 = tpu.iota {dimensions = array<i32: 1>} : vector<8x21xi32>
    %c20_i32 = arith.constant 20 : i32
    %3 = vector.broadcast %c20_i32 : i32 to vector<8x21xi32>
    %4 = arith.cmpi ne, %2, %3 : vector<8x21xi32>
    %cst = arith.constant 0.000000e+00 : f32
    %5 = vector.broadcast %cst : f32 to vector<8x21xf32>
    %6 = vector.extract_strided_slice %1 {offsets = [0, 0], sizes = [8, 1], strides = [1, 1]} : vector<8x9xi32> to vector<8x1xi32>
    %7 = vector.broadcast %6 : vector<8x1xi32> to vector<8x21xi32>
    %8 = arith.cmpi eq, %7, %2 : vector<8x21xi32>
    %9 = arith.andi %8, %4 : vector<8x21xi1>
    %10 = arith.extui %9 : vector<8x21xi1> to vector<8x21xi32>
    %11 = arith.sitofp %10 : vector<8x21xi32> to vector<8x21xf32>
    %12 = arith.addf %5, %11 : vector<8x21xf32>
    %13 = vector.extract_strided_slice %1 {offsets = [0, 1], sizes = [8, 1], strides = [1, 1]} : vector<8x9xi32> to vector<8x1xi32>
    %14 = vector.broadcast %13 : vector<8x1xi32> to vector<8x21xi32>
    %15 = arith.cmpi eq, %14, %2 : vector<8x21xi32>
    %16 = arith.andi %15, %4 : vector<8x21xi1>
    %17 = arith.extui %16 : vector<8x21xi1> to vector<8x21xi32>
    %18 = arith.sitofp %17 : vector<8x21xi32> to vector<8x21xf32>
    %19 = arith.addf %12, %18 : vector<8x21xf32>
    %20 = vector.extract_strided_slice %1 {offsets = [0, 2], sizes = [8, 1], strides = [1, 1]} : vector<8x9xi32> to vector<8x1xi32>
    %21 = vector.broadcast %20 : vector<8x1xi32> to vector<8x21xi32>
    %22 = arith.cmpi eq, %21, %2 : vector<8x21xi32>
    %23 = arith.andi %22, %4 : vector<8x21xi1>
    %24 = arith.extui %23 : vector<8x21xi1> to vector<8x21xi32>
    %25 = arith.sitofp %24 : vector<8x21xi32> to vector<8x21xf32>
    %26 = arith.addf %19, %25 : vector<8x21xf32>
    %27 = vector.extract_strided_slice %1 {offsets = [0, 3], sizes = [8, 1], strides = [1, 1]} : vector<8x9xi32> to vector<8x1xi32>
    %28 = vector.broadcast %27 : vector<8x1xi32> to vector<8x21xi32>
    %29 = arith.cmpi eq, %28, %2 : vector<8x21xi32>
    %30 = arith.andi %29, %4 : vector<8x21xi1>
    %31 = arith.extui %30 : vector<8x21xi1> to vector<8x21xi32>
    %32 = arith.sitofp %31 : vector<8x21xi32> to vector<8x21xf32>
    %33 = arith.addf %26, %32 : vector<8x21xf32>
    %34 = vector.extract_strided_slice %1 {offsets = [0, 4], sizes = [8, 1], strides = [1, 1]} : vector<8x9xi32> to vector<8x1xi32>
    %35 = vector.broadcast %34 : vector<8x1xi32> to vector<8x21xi32>
    %36 = arith.cmpi eq, %35, %2 : vector<8x21xi32>
    %37 = arith.andi %36, %4 : vector<8x21xi1>
    %38 = arith.extui %37 : vector<8x21xi1> to vector<8x21xi32>
    %39 = arith.sitofp %38 : vector<8x21xi32> to vector<8x21xf32>
    %40 = arith.addf %33, %39 : vector<8x21xf32>
    %41 = vector.extract_strided_slice %1 {offsets = [0, 5], sizes = [8, 1], strides = [1, 1]} : vector<8x9xi32> to vector<8x1xi32>
    %42 = vector.broadcast %41 : vector<8x1xi32> to vector<8x21xi32>
    %43 = arith.cmpi eq, %42, %2 : vector<8x21xi32>
    %44 = arith.andi %43, %4 : vector<8x21xi1>
    %45 = arith.extui %44 : vector<8x21xi1> to vector<8x21xi32>
    %46 = arith.sitofp %45 : vector<8x21xi32> to vector<8x21xf32>
    %47 = arith.addf %40, %46 : vector<8x21xf32>
    %48 = vector.extract_strided_slice %1 {offsets = [0, 6], sizes = [8, 1], strides = [1, 1]} : vector<8x9xi32> to vector<8x1xi32>
    %49 = vector.broadcast %48 : vector<8x1xi32> to vector<8x21xi32>
    %50 = arith.cmpi eq, %49, %2 : vector<8x21xi32>
    %51 = arith.andi %50, %4 : vector<8x21xi1>
    %52 = arith.extui %51 : vector<8x21xi1> to vector<8x21xi32>
    %53 = arith.sitofp %52 : vector<8x21xi32> to vector<8x21xf32>
    %54 = arith.addf %47, %53 : vector<8x21xf32>
    %55 = vector.extract_strided_slice %1 {offsets = [0, 7], sizes = [8, 1], strides = [1, 1]} : vector<8x9xi32> to vector<8x1xi32>
    %56 = vector.broadcast %55 : vector<8x1xi32> to vector<8x21xi32>
    %57 = arith.cmpi eq, %56, %2 : vector<8x21xi32>
    %58 = arith.andi %57, %4 : vector<8x21xi1>
    %59 = arith.extui %58 : vector<8x21xi1> to vector<8x21xi32>
    %60 = arith.sitofp %59 : vector<8x21xi32> to vector<8x21xf32>
    %61 = arith.addf %54, %60 : vector<8x21xf32>
    %62 = vector.extract_strided_slice %1 {offsets = [0, 8], sizes = [8, 1], strides = [1, 1]} : vector<8x9xi32> to vector<8x1xi32>
    %63 = vector.broadcast %62 : vector<8x1xi32> to vector<8x21xi32>
    %64 = arith.cmpi eq, %63, %2 : vector<8x21xi32>
    %65 = arith.andi %64, %4 : vector<8x21xi1>
    %66 = arith.extui %65 : vector<8x21xi1> to vector<8x21xi32>
    %67 = arith.sitofp %66 : vector<8x21xi32> to vector<8x21xf32>
    %68 = arith.addf %61, %67 : vector<8x21xf32>
    %cst_3 = arith.constant dense<0.000000e+00> : vector<8x16xf32>
    %69 = tpu.matmul %68, %0, %cst_3 {dimension_numbers = #tpu.dot_dimension_numbers<[1], [0], [0], [1], [0, 0, 1, 1], [], []>} : vector<8x21xf32>, vector<21x16xf32>, vector<8x16xf32> -> vector<8x16xf32>
    %c0_4 = arith.constant 0 : index
    %c0_5 = arith.constant 0 : index
    %70 = vector.load %arg3[%c0_4, %c0_5] : memref<8x1xf32, #tpu.memory_space<vmem>>, vector<8x1xf32>
    %71 = vector.broadcast %70 : vector<8x1xf32> to vector<8x16xf32>
    %72 = arith.mulf %69, %71 : vector<8x16xf32>
    %c0_6 = arith.constant 0 : index
    %c0_7 = arith.constant 0 : index
    %73 = vector.load %arg2[%c0_6, %c0_7] : memref<8x8xi32, #tpu.memory_space<vmem>>, vector<8x8xi32>
    %74 = tpu.iota {dimensions = array<i32: 1>} : vector<8x21xi32>
    %c20_i32_8 = arith.constant 20 : i32
    %75 = vector.broadcast %c20_i32_8 : i32 to vector<8x21xi32>
    %76 = arith.cmpi ne, %74, %75 : vector<8x21xi32>
    %cst_9 = arith.constant 0.000000e+00 : f32
    %77 = vector.broadcast %cst_9 : f32 to vector<8x21xf32>
    %78 = vector.extract_strided_slice %73 {offsets = [0, 0], sizes = [8, 1], strides = [1, 1]} : vector<8x8xi32> to vector<8x1xi32>
    %79 = vector.broadcast %78 : vector<8x1xi32> to vector<8x21xi32>
    %80 = arith.cmpi eq, %79, %74 : vector<8x21xi32>
    %81 = arith.andi %80, %76 : vector<8x21xi1>
    %82 = arith.extui %81 : vector<8x21xi1> to vector<8x21xi32>
    %83 = arith.sitofp %82 : vector<8x21xi32> to vector<8x21xf32>
    %84 = arith.addf %77, %83 : vector<8x21xf32>
    %85 = vector.extract_strided_slice %73 {offsets = [0, 1], sizes = [8, 1], strides = [1, 1]} : vector<8x8xi32> to vector<8x1xi32>
    %86 = vector.broadcast %85 : vector<8x1xi32> to vector<8x21xi32>
    %87 = arith.cmpi eq, %86, %74 : vector<8x21xi32>
    %88 = arith.andi %87, %76 : vector<8x21xi1>
    %89 = arith.extui %88 : vector<8x21xi1> to vector<8x21xi32>
    %90 = arith.sitofp %89 : vector<8x21xi32> to vector<8x21xf32>
    %91 = arith.addf %84, %90 : vector<8x21xf32>
    %92 = vector.extract_strided_slice %73 {offsets = [0, 2], sizes = [8, 1], strides = [1, 1]} : vector<8x8xi32> to vector<8x1xi32>
    %93 = vector.broadcast %92 : vector<8x1xi32> to vector<8x21xi32>
    %94 = arith.cmpi eq, %93, %74 : vector<8x21xi32>
    %95 = arith.andi %94, %76 : vector<8x21xi1>
    %96 = arith.extui %95 : vector<8x21xi1> to vector<8x21xi32>
    %97 = arith.sitofp %96 : vector<8x21xi32> to vector<8x21xf32>
    %98 = arith.addf %91, %97 : vector<8x21xf32>
    %99 = vector.extract_strided_slice %73 {offsets = [0, 3], sizes = [8, 1], strides = [1, 1]} : vector<8x8xi32> to vector<8x1xi32>
    %100 = vector.broadcast %99 : vector<8x1xi32> to vector<8x21xi32>
    %101 = arith.cmpi eq, %100, %74 : vector<8x21xi32>
    %102 = arith.andi %101, %76 : vector<8x21xi1>
    %103 = arith.extui %102 : vector<8x21xi1> to vector<8x21xi32>
    %104 = arith.sitofp %103 : vector<8x21xi32> to vector<8x21xf32>
    %105 = arith.addf %98, %104 : vector<8x21xf32>
    %106 = vector.extract_strided_slice %73 {offsets = [0, 4], sizes = [8, 1], strides = [1, 1]} : vector<8x8xi32> to vector<8x1xi32>
    %107 = vector.broadcast %106 : vector<8x1xi32> to vector<8x21xi32>
    %108 = arith.cmpi eq, %107, %74 : vector<8x21xi32>
    %109 = arith.andi %108, %76 : vector<8x21xi1>
    %110 = arith.extui %109 : vector<8x21xi1> to vector<8x21xi32>
    %111 = arith.sitofp %110 : vector<8x21xi32> to vector<8x21xf32>
    %112 = arith.addf %105, %111 : vector<8x21xf32>
    %113 = vector.extract_strided_slice %73 {offsets = [0, 5], sizes = [8, 1], strides = [1, 1]} : vector<8x8xi32> to vector<8x1xi32>
    %114 = vector.broadcast %113 : vector<8x1xi32> to vector<8x21xi32>
    %115 = arith.cmpi eq, %114, %74 : vector<8x21xi32>
    %116 = arith.andi %115, %76 : vector<8x21xi1>
    %117 = arith.extui %116 : vector<8x21xi1> to vector<8x21xi32>
    %118 = arith.sitofp %117 : vector<8x21xi32> to vector<8x21xf32>
    %119 = arith.addf %112, %118 : vector<8x21xf32>
    %120 = vector.extract_strided_slice %73 {offsets = [0, 6], sizes = [8, 1], strides = [1, 1]} : vector<8x8xi32> to vector<8x1xi32>
    %121 = vector.broadcast %120 : vector<8x1xi32> to vector<8x21xi32>
    %122 = arith.cmpi eq, %121, %74 : vector<8x21xi32>
    %123 = arith.andi %122, %76 : vector<8x21xi1>
    %124 = arith.extui %123 : vector<8x21xi1> to vector<8x21xi32>
    %125 = arith.sitofp %124 : vector<8x21xi32> to vector<8x21xf32>
    %126 = arith.addf %119, %125 : vector<8x21xf32>
    %127 = vector.extract_strided_slice %73 {offsets = [0, 7], sizes = [8, 1], strides = [1, 1]} : vector<8x8xi32> to vector<8x1xi32>
    %128 = vector.broadcast %127 : vector<8x1xi32> to vector<8x21xi32>
    %129 = arith.cmpi eq, %128, %74 : vector<8x21xi32>
    %130 = arith.andi %129, %76 : vector<8x21xi1>
    %131 = arith.extui %130 : vector<8x21xi1> to vector<8x21xi32>
    %132 = arith.sitofp %131 : vector<8x21xi32> to vector<8x21xf32>
    %133 = arith.addf %126, %132 : vector<8x21xf32>
    %cst_10 = arith.constant dense<0.000000e+00> : vector<8x16xf32>
    %134 = tpu.matmul %133, %0, %cst_10 {dimension_numbers = #tpu.dot_dimension_numbers<[1], [0], [0], [1], [0, 0, 1, 1], [], []>} : vector<8x21xf32>, vector<21x16xf32>, vector<8x16xf32> -> vector<8x16xf32>
    %c0_11 = arith.constant 0 : index
    %c0_12 = arith.constant 0 : index
    %135 = vector.load %arg4[%c0_11, %c0_12] : memref<8x1xf32, #tpu.memory_space<vmem>>, vector<8x1xf32>
    %136 = vector.broadcast %135 : vector<8x1xf32> to vector<8x16xf32>
    %137 = arith.mulf %134, %136 : vector<8x16xf32>
    %c0_13 = arith.constant 0 : index
    %c0_14 = arith.constant 0 : index
    %138 = vector.load %arg6[%c0_13, %c0_14] : memref<16x32xf32, #tpu.memory_space<vmem>>, vector<16x32xf32>
    %cst_15 = arith.constant dense<0.000000e+00> : vector<8x32xf32>
    %139 = tpu.matmul %72, %138, %cst_15 {dimension_numbers = #tpu.dot_dimension_numbers<[1], [0], [0], [1], [0, 0, 1, 1], [], []>} : vector<8x16xf32>, vector<16x32xf32>, vector<8x32xf32> -> vector<8x32xf32>
    %c0_16 = arith.constant 0 : index
    %c0_17 = arith.constant 0 : index
    %140 = vector.load %arg7[%c0_16, %c0_17] : memref<16x32xf32, #tpu.memory_space<vmem>>, vector<16x32xf32>
    %cst_18 = arith.constant dense<0.000000e+00> : vector<8x32xf32>
    %141 = tpu.matmul %137, %140, %cst_18 {dimension_numbers = #tpu.dot_dimension_numbers<[1], [0], [0], [1], [0, 0, 1, 1], [], []>} : vector<8x16xf32>, vector<16x32xf32>, vector<8x32xf32> -> vector<8x32xf32>
    %142 = arith.addf %139, %141 : vector<8x32xf32>
    %c0_19 = arith.constant 0 : index
    %c0_20 = arith.constant 0 : index
    %143 = vector.load %arg8[%c0_19, %c0_20] : memref<1x32xf32, #tpu.memory_space<vmem>>, vector<1x32xf32>
    %144 = vector.broadcast %143 : vector<1x32xf32> to vector<8x32xf32>
    %145 = arith.addf %142, %144 : vector<8x32xf32>
    %cst_21 = arith.constant 0.000000e+00 : f32
    %146 = vector.broadcast %cst_21 : f32 to vector<8x32xf32>
    %147 = arith.maximumf %145, %146 : vector<8x32xf32>
    %c0_22 = arith.constant 0 : index
    %c0_23 = arith.constant 0 : index
    %148 = vector.load %arg9[%c0_22, %c0_23] : memref<32x1xf32, #tpu.memory_space<vmem>>, vector<32x1xf32>
    %cst_24 = arith.constant dense<0.000000e+00> : vector<8x1xf32>
    %149 = tpu.matmul %147, %148, %cst_24 {dimension_numbers = #tpu.dot_dimension_numbers<[1], [0], [0], [1], [0, 0, 1, 1], [], []>} : vector<8x32xf32>, vector<32x1xf32>, vector<8x1xf32> -> vector<8x1xf32>
    %c0_25 = arith.constant 0 : index
    %c0_26 = arith.constant 0 : index
    %150 = memref.load %arg10[%c0_25, %c0_26] : memref<1x1xf32, #tpu.memory_space<smem>>
    %151 = vector.broadcast %150 : f32 to vector<8x1xf32>
    %152 = arith.addf %149, %151 : vector<8x1xf32>
    %c0_27 = arith.constant 0 : index
    %c0_28 = arith.constant 0 : index
    %153 = vector.load %arg11[%c0_27, %c0_28] : memref<8x1xf32, #tpu.memory_space<vmem>>, vector<8x1xf32>
    tpu.vector_store %arg11[%c0_27, %c0_28], %152 {strides = array<i32>} : memref<8x1xf32, #tpu.memory_space<vmem>>, vector<8x1xf32>,
    return
  }
  func.func @transform_0(%arg0: i32) -> (i32, i32) {
    %c0_i32 = arith.constant 0 : i32
    %c0_i32_0 = arith.constant 0 : i32
    return %arg0, %c0_i32 : i32, i32
  }
  func.func @transform_1(%arg0: i32) -> (i32, i32) {
    %c0_i32 = arith.constant 0 : i32
    %c0_i32_0 = arith.constant 0 : i32
    return %arg0, %c0_i32 : i32, i32
  }
  func.func @transform_2(%arg0: i32) -> (i32, i32) {
    %c0_i32 = arith.constant 0 : i32
    %c0_i32_0 = arith.constant 0 : i32
    return %arg0, %c0_i32 : i32, i32
  }
  func.func @transform_3(%arg0: i32) -> (i32, i32) {
    %c0_i32 = arith.constant 0 : i32
    %c0_i32_0 = arith.constant 0 : i32
    return %arg0, %c0_i32 : i32, i32
  }
  func.func @transform_4(%arg0: i32) -> (i32, i32) {
    %c0_i32 = arith.constant 0 : i32
    %c0_i32_0 = arith.constant 0 : i32
    %c0_i32_1 = arith.constant 0 : i32
    return %c0_i32, %c0_i32_0 : i32, i32
  }
  func.func @transform_5(%arg0: i32) -> (i32, i32) {
    %c0_i32 = arith.constant 0 : i32
    %c0_i32_0 = arith.constant 0 : i32
    %c0_i32_1 = arith.constant 0 : i32
    return %c0_i32, %c0_i32_0 : i32, i32
  }
  func.func @transform_6(%arg0: i32) -> (i32, i32) {
    %c0_i32 = arith.constant 0 : i32
    %c0_i32_0 = arith.constant 0 : i32
    %c0_i32_1 = arith.constant 0 : i32
    return %c0_i32, %c0_i32_0 : i32, i32
  }
  func.func @transform_7(%arg0: i32) -> (i32, i32) {
    %c0_i32 = arith.constant 0 : i32
    %c0_i32_0 = arith.constant 0 : i32
    %c0_i32_1 = arith.constant 0 : i32
    return %c0_i32, %c0_i32_0 : i32, i32
  }
  func.func @transform_8(%arg0: i32) -> (i32, i32) {
    %c0_i32 = arith.constant 0 : i32
    %c0_i32_0 = arith.constant 0 : i32
    %c0_i32_1 = arith.constant 0 : i32
    return %c0_i32, %c0_i32_0 : i32, i32
  }
  func.func @transform_9(%arg0: i32) -> (i32, i32) {
    %c0_i32 = arith.constant 0 : i32
    %c0_i32_0 = arith.constant 0 : i32
    %c0_i32_1 = arith.constant 0 : i32
    return %c0_i32, %c0_i32_0 : i32, i32
  }
  func.func @transform_10(%arg0: i32) -> (i32, i32) {
    %c0_i32 = arith.constant 0 : i32
    %c0_i32_0 = arith.constant 0 : i32
    return %arg0, %c0_i32 : i32, i32
  }
}

</mosaic_0001>

<bundles_post_ra>
// kernel: tpu_custom_call.1
= control target key start
LH: loop header
LB: loop body
LE: loop exit
PB: predicated region body
PF: predicated region fallthrough
CT: control target
= control target key end

     0   :  { %v725_v0 = vmov 0   ;;  %v726_v3 = vmov 1   ;;  %v727_v4 = vmov 2   ;;  %v728_v5 = vmov 3   ;;  %s947_s1 = inlined_call_operand.vmem [shape: s32[8,8], index: 1, kind: input, shape index: {}]   ;;  %s948_s0 = inlined_call_operand.vmem [shape: s32[8,9], index: 0, kind: input, shape index: {}]   ;;  %s949_s4 = inlined_call_operand.vmem [shape: f32[21,16], index: 4, kind: input, shape index: {}]   ;;  %s950_s3 = inlined_call_operand.vmem [shape: f32[8,1], index: 3, kind: input, shape index: {}]   ;;  %s951_s2 = inlined_call_operand.vmem [shape: f32[8,1], index: 2, kind: input, shape index: {}]   ;;  %s952_s6 = inlined_call_operand.vmem [shape: f32[16,32], index: 6, kind: input, shape index: {}]   ;;  %s953_s5 = inlined_call_operand.vmem [shape: f32[16,32], index: 5, kind: input, shape index: {}]   ;;  %s954_s8 = inlined_call_operand.vmem [shape: f32[32,1], index: 8, kind: input, shape index: {}]   ;;  %s955_s7 = inlined_call_operand.vmem [shape: f32[1,32], index: 7, kind: input, shape index: {}]   ;;  %s956_s9 = inlined_call_operand.<no memory space> [shape: f32[1,1], index: 9, kind: input, shape index: {}]   ;;  %s957_s10 = inlined_call_operand.vmem [shape: f32[8,1], index: 10, kind: output, shape index: {}]  }
   0x1   :  { %710 = vset.pattern.permute.xlu1 %v725_v0  ;;  %708 = vset.pattern.permute.xlu0 %v725_v0  ;;  %v200_v1 = vld [vmem:[%s947_s1] sm:$0xff]  ;;  %v729_v6 = vmov 4   ;;  %v730_v7 = vmov 5   ;;  %v731_v8 = vmov 7   ;;  %v732_v9 = vmov 6   ;;  %v37_v11 = vld [vmem:[%s949_s4 + $0x8] sm:$0xff] }
   0x2   :  { %v39_v2 = vld [vmem:[%s948_s0] sm:$0xff]  ;;  %202 = vperm.xlu0 %708, %v200_v1   ;;  %v733_v13 = vmov 0.0|0.0   ;;  %v734_v14 = vmov 0.0   ;;  %v38_v15 = vld [vmem:[%s949_s4 + $0x10] sm:$0x1f]  ;;  %vm119_vm0 = vcmask 1044480   ;;  %v40_v22 = vlaneseq }
   0x3   :  { %44 = vperm.xlu1 %710, %v39_v2   ;;  %v36_v10 = vld [vmem:[%s949_s4] sm:$0xff]  ;;  %681 = vmatprep.subr.bf16.mxu1 %v733_v13  ;;  %vm735_vm1 = vmmov 0   ;;  %v736_v16 = vmov 8  }
   0x4   :  { %v679_v12 = vpack.c.bf16 %v37_v11, %v36_v10  ;;  %678 = vmatprep.subr.bf16.mxu0 %v733_v13  ;;  %650 = vmatprep.mubr.msk.f32.mxu1 %vm735_vm1, %v734_v14  ;;  %v338_v17 = vld [vmem:[%s950_s3] sm:$0xff]  ;;  %v827_v25 = vand.u32 127, %v40_v22  ;;  %v346_v11 = vld [vmem:[%s953_s5 + $0x8] sm:$0xff] }
   0x5   :  { %641 = vmatprep.mubr.msk.f32.mxu0 %vm735_vm1, %v734_v14  ;;  %v193_v18 = vld [vmem:[%s951_s2] sm:$0xff] }
   0x6   :  { %709 = vset.pattern.permute.xlu0 %v726_v3  ;;  %683 = vmatpush3.bf16.msra.mxu1 %v679_v12  ;;  %vm42_vm4 = vcmp.ne.s32.totalorder %v827_v25, 20  ;;  %v345_v10 = vld [vmem:[%s953_s5] sm:$0xff] }
   0x7   :  { %711 = vset.pattern.permute.xlu1 %v726_v3  ;;  %210 = vperm.xlu0 %709, %v200_v1  }
   0x8   :  { %52 = vperm.xlu1 %711, %v39_v2   ;;  %680 = vmatpush3.bf16.msra.mxu0 %v679_v12 }
   0x9   :  { %648 = vmatprep.subr.mxu1 %v734_v14  ;;  %639 = vmatprep.subr.mxu0 %v734_v14 }
   0xa   :  { %649 = vmatpush3.msk.msra.mxu1 %vm119_vm0, %v38_v15 }
   0xb   :  { %713 = vset.pattern.permute.xlu0 %v727_v4  ;;  %684 = vmatprep.subr.bf16.mxu1 %v733_v13 }
   0xc   :  { %712 = vset.pattern.permute.xlu1 %v727_v4  ;;  %60 = vperm.xlu0 %713, %v39_v2  }
   0xd   :  { %218 = vperm.xlu1 %712, %v200_v1   ;;  %640 = vmatpush3.msk.msra.mxu0 %vm119_vm0, %v38_v15 }
   0xe   :  { %690 = vmatprep.subr.bf16.mxu0 %v733_v13 }
  0x10   :  { %715 = vset.pattern.permute.xlu0 %v729_v6 }
  0x11   :  { %714 = vset.pattern.permute.xlu1 %v728_v5  ;;  %234 = vperm.xlu0 %715, %v200_v1  }
  0x12   :  { %226 = vperm.xlu1 %714, %v200_v1  }
  0x15   :  { %718 = vset.pattern.permute.xlu0 %v730_v7 }
  0x16   :  { %68 = vperm.xlu1 %714, %v39_v2   ;;  %84 = vperm.xlu0 %718, %v39_v2  }
  0x1a   :  { %716 = vset.pattern.permute.xlu1 %v729_v6  ;;  %720 = vset.pattern.permute.xlu0 %v731_v8 }
  0x1b   :  { %76 = vperm.xlu1 %716, %v39_v2   ;;  %258 = vperm.xlu0 %720, %v200_v1  }
  0x1f   :  { %717 = vset.pattern.permute.xlu1 %v730_v7  ;;  %723 = vset.pattern.permute.xlu0 %v725_v0  ;;  %v347_v7 = vld [vmem:[%s952_s6] sm:$0xff] }
  0x20   :  { %242 = vperm.xlu1 %717, %v200_v1   ;;  %341 = vperm.xlu0 %723, %v338_v17  }
  0x24   :  { %719 = vset.pattern.permute.xlu1 %v732_v9 }
  0x25   :  { %250 = vperm.xlu1 %719, %v200_v1  }
  0x29   :  { %92 = vperm.xlu1 %719, %v39_v2  }
  0x2d   :  { %721 = vset.pattern.permute.xlu1 %v731_v8  ;;  %v348_v8 = vld [vmem:[%s952_s6 + $0x8] sm:$0xff] }
  0x2e   :  { %100 = vperm.xlu1 %721, %v39_v2   ;;  %v685_v9 = vpack.c.bf16 %v348_v8, %v347_v7 }
  0x32   :  { %722 = vset.pattern.permute.xlu1 %v736_v16  ;;  %v688_v16 = vpack.c.bf16 %v346_v11, %v345_v10 }
  0x33   :  { %108 = vperm.xlu1 %722, %v39_v2  }
  0x37   :  { %724 = vset.pattern.permute.xlu1 %v725_v0 }
  0x38   :  { %196 = vperm.xlu1 %724, %v193_v18  }
  0x81   :  { %v203_v20 = vpop.permute.xlu0 %202 }
  0x82   :  { %v45_v19 = vpop.permute.xlu1 %44  ;;  %vm204_vm2 = vcmp.eq.s32.totalorder %v203_v20, %v827_v25 }
  0x83   :  { %vm205_vm5 = vmand %vm204_vm2, %vm42_vm4  ;;  %vm46_vm12 = vcmp.eq.s32.totalorder %v45_v19, %v827_v25 }
  0x84   :  { %v602_v30 = vsel %vm205_vm5, 1.0, %v734_v14  ;;  %vm853_vm15 = vmand %vm46_vm12, %vm42_vm4 }
  0x85   :  { %v591_v47 = vsel %vm853_vm15, 1.0, %v734_v14 }
  0x86   :  { %v211_v23 = vpop.permute.xlu0 %210 }
  0x87   :  { %v53_v21 = vpop.permute.xlu1 %52  ;;  %vm212_vm3 = vcmp.eq.s32.totalorder %v211_v23, %v827_v25  ;;  %v505_v23 = vld [vmem:[%s954_s8] sm:$0xff] }
  0x88   :  { %vm213_vm6 = vmand %vm212_vm3, %vm42_vm4  ;;  %vm54_vm13 = vcmp.eq.s32.totalorder %v53_v21, %v827_v25 }
  0x89   :  { %v603_v31 = vsel %vm213_vm6, 1.0, %v734_v14  ;;  %vm55_vm2 = vmand %vm54_vm13, %vm42_vm4 }
  0x8a   :  { %v216_v32 = vadd.f32 %v603_v31, %v602_v30  ;;  %v592_v43 = vsel %vm55_vm2, 1.0, %v734_v14  ;;  %vm115_vm2 = vcmask 171008   ;;  %v614_v31 = vld [vmem:[%s955_s7] ss:$0 sm:$0xff] }
  0x8b   :  { %v61_v27 = vpop.permute.xlu0 %60  ;;  %v58_v49 = vadd.f32 %v592_v43, %v591_v47 }
  0x8c   :  { %v219_v24 = vpop.permute.xlu1 %218  ;;  %vm62_vm0 = vcmp.eq.s32.totalorder %v61_v27, %v827_v25 }
  0x8d   :  { %vm220_vm7 = vcmp.eq.s32.totalorder %v219_v24, %v827_v25  ;;  %v506_v24 = vld [vmem:[%s954_s8 + $0x8] sm:$0xff] }
  0x8e   :  { %vm221_vm9 = vmand %vm220_vm7, %vm42_vm4 }
  0x8f   :  { %v604_v35 = vsel %vm221_vm9, 1.0, %v734_v14 }
  0x90   :  { %v235_v29 = vpop.permute.xlu0 %234  ;;  %v224_v37 = vadd.f32 %v604_v35, %v216_v32  ;;  %v510_v35 = vstv %s956_s9 }
  0x91   :  { %v227_v26 = vpop.permute.xlu1 %226  ;;  %vm236_vm11 = vcmp.eq.s32.totalorder %v235_v29, %v827_v25 }
  0x92   :  { %vm228_vm8 = vcmp.eq.s32.totalorder %v227_v26, %v827_v25  ;;  %vm237_vm14 = vmand %vm236_vm11, %vm42_vm4  ;;  %v508_v26 = vld [vmem:[%s954_s8 + $0x18] sm:$0xff] }
  0x93   :  { %vm229_vm10 = vmand %vm228_vm8, %vm42_vm4  ;;  %v606_v42 = vsel %vm237_vm14, 1.0, %v734_v14 }
  0x94   :  { %v605_v36 = vsel %vm229_vm10, 1.0, %v734_v14  ;;  %vm63_vm8 = vmand %vm62_vm0, %vm42_vm4 }
  0x95   :  { %v69_v28 = vpop.permute.xlu1 %68  ;;  %v85_v34 = vpop.permute.xlu0 %84  ;;  %v232_v41 = vadd.f32 %v605_v36, %v224_v37  ;;  %v593_v48 = vsel %vm63_vm8, 1.0, %v734_v14 }
  0x96   :  { %vm70_vm3 = vcmp.eq.s32.totalorder %v69_v28, %v827_v25  ;;  %vm86_vm0 = vcmp.eq.s32.totalorder %v85_v34, %v827_v25  ;;  %v66_v54 = vadd.f32 %v593_v48, %v58_v49 }
  0x97   :  { %vm71_vm10 = vmand %vm70_vm3, %vm42_vm4  ;;  %v240_v45 = vadd.f32 %v606_v42, %v232_v41 }
  0x98   :  { %v594_v51 = vsel %vm71_vm10, 1.0, %v734_v14  ;;  %vm87_vm3 = vmand %vm86_vm0, %vm42_vm4  ;;  %vm585_vm10 = vcmask 7168  }
  0x99   :  { %v74_v58 = vadd.f32 %v594_v51, %v66_v54  ;;  %v596_v61 = vsel %vm87_vm3, 1.0, %v734_v14 }
  0x9a   :  { %v77_v33 = vpop.permute.xlu1 %76  ;;  %v259_v38 = vpop.permute.xlu0 %258 }
  0x9b   :  { %vm260_vm7 = vcmp.eq.s32.totalorder %v259_v38, %v827_v25  ;;  %vm78_vm9 = vcmp.eq.s32.totalorder %v77_v33, %v827_v25 }
  0x9c   :  { %vm261_vm11 = vmand %vm260_vm7, %vm42_vm4 }
  0x9d   :  { %vm79_vm12 = vmand %vm78_vm9, %vm42_vm4  ;;  %v609_v53 = vsel %vm261_vm11, 1.0, %v734_v14 }
  0x9e   :  { %v595_v57 = vsel %vm79_vm12, 1.0, %v734_v14 }
  0x9f   :  { %v243_v40 = vpop.permute.xlu1 %242  ;;  %v82_v60 = vadd.f32 %v595_v57, %v74_v58  ;;  %v342_v12 = vpop.permute.xlu0 %341 }
  0xa0   :  { %vm244_vm5 = vcmp.eq.s32.totalorder %v243_v40, %v827_v25 }
  0xa1   :  { %vm245_vm6 = vmand %vm244_vm5, %vm42_vm4  ;;  %v90_v0 = vadd.f32 %v596_v61, %v82_v60 }
  0xa2   :  { %v607_v44 = vsel %vm245_vm6, 1.0, %v734_v14 }
  0xa3   :  { %v248_v50 = vadd.f32 %v607_v44, %v240_v45 }
  0xa4   :  { %v251_v46 = vpop.permute.xlu1 %250 }
  0xa5   :  { %vm252_vm13 = vcmp.eq.s32.totalorder %v251_v46, %v827_v25 }
  0xa6   :  { %vm253_vm14 = vmand %vm252_vm13, %vm42_vm4 }
  0xa7   :  { %v608_v52 = vsel %vm253_vm14, 1.0, %v734_v14 }
  0xa8   :  { %v256_v55 = vadd.f32 %v608_v52, %v248_v50  ;;  %v93_v56 = vpop.permute.xlu1 %92 }
  0xa9   :  { %vm94_vm15 = vcmp.eq.s32.totalorder %v93_v56, %v827_v25 }
  0xaa   :  { %v264_v59 = vadd.f32 %v609_v53, %v256_v55  ;;  %vm95_vm5 = vmand %vm94_vm15, %vm42_vm4 }
  0xab   :  { %v597_v63 = vsel %vm95_vm5, 1.0, %v734_v14 }
  0xac   :  { %651 = vmatmul.mubr.msk.f32.vlgmr.msra.gmra.mrb[0].mxu1 %vm115_vm2, %v264_v59  ;;  %v98_v2 = vadd.f32 %v597_v63, %v90_v0 }
  0xad   :  { %v101_v62 = vpop.permute.xlu1 %100  ;;  %657 = vmatprep.mubr.msk.f32.mxu1 %vm735_vm1, %v734_v14  ;;  %686 = vmatpush3.bf16.msra.mxu1 %v685_v9 }
  0xae   :  { %vm102_vm6 = vcmp.eq.s32.totalorder %v101_v62, %v827_v25  ;;  %687 = vmatprep.subr.bf16.mxu1 %v733_v13 }
  0xaf   :  { %vm103_vm7 = vmand %vm102_vm6, %vm42_vm4 }
  0xb0   :  { %v598_v1 = vsel %vm103_vm7, 1.0, %v734_v14 }
  0xb1   :  { %v106_v4 = vadd.f32 %v598_v1, %v98_v2 }
  0xb2   :  { %v109_v3 = vpop.permute.xlu1 %108 }
  0xb3   :  { %vm110_vm8 = vcmp.eq.s32.totalorder %v109_v3, %v827_v25  ;;  %v691_v25 = vpack.c.bf16 %v506_v24, %v505_v23 }
  0xb4   :  { %vm111_vm9 = vmand %vm110_vm8, %vm42_vm4  ;;  %vm349_vm4 = vcmask 130048  }
  0xb5   :  { %v599_v5 = vsel %vm111_vm9, 1.0, %v734_v14 }
  0xb6   :  { %v114_v6 = vadd.f32 %v599_v5, %v106_v4 }
  0xb7   :  { %v197_v19 = vpop.permute.xlu1 %196 }
  0xb8   :  { %642 = vmatmul.mubr.msk.f32.vlgmr.msra.gmra.mrb[0].mxu0 %vm115_vm2, %v114_v6 }
  0xb9   :  { %675 = vmatprep.mubr.msk.f32.mxu0 %vm735_vm1, %v734_v14  ;;  %692 = vmatpush3.bf16.msra.mxu0 %v691_v25 }
  0xba   :  { %693 = vmatprep.subr.bf16.mxu0 %v733_v13 }
 0x17f   :  { %v334_v15 = vpop.f32.mrb[0].mxu1 }
 0x180   :  { %v344_v17 = vmul.f32 %v342_v12, %v334_v15  ;;  %v652_v18 = vpop.f32.mrb[1].mxu1 }
 0x182   :  { %658 = vmatmul.mubr.msk.f32.vlgmr.msra.gmra.mrb[2].mxu1 %vm349_vm4, %v344_v17 }
 0x183   :  { %689 = vmatpush3.bf16.msra.mxu1 %v688_v16  ;;  %664 = vmatprep.mubr.msk.f32.mxu1 %vm735_vm1, %v734_v14  ;;  %v507_v14 = vld [vmem:[%s954_s8 + $0x10] sm:$0xff]  ;;  %vm511_vm1 = vcmask 261120  }
 0x184   :  { %v694_v27 = vpack.c.bf16 %v508_v26, %v507_v14 }
 0x186   :  { %695 = vmatpush3.bf16.msra.mxu0 %v694_v27 }
 0x18b   :  { %v189_v20 = vpop.f32.mrb[0].mxu0 }
 0x18c   :  { %v199_v21 = vmul.f32 %v197_v19, %v189_v20  ;;  %v643_v22 = vpop.f32.mrb[1].mxu0 }
 0x18e   :  { %665 = vmatmul.mubr.msk.f32.vlgmr.msra.gmra.mrb[4].mxu1 %vm349_vm4, %v199_v21 }
 0x255   :  { %v419_v28 = vpop.f32.mrb[2].mxu1 }
 0x256   :  { %v659_v29 = vpop.f32.mrb[3].mxu1 }
 0x261   :  { %v492_v30 = vpop.f32.mrb[4].mxu1 }
 0x262   :  { %v493_v32 = vadd.f32 %v492_v30, %v419_v28  ;;  %v666_v33 = vpop.f32.mrb[5].mxu1 }
 0x264   :  { %v503_v13 = vadd.f32 %v614_v31, %v493_v32 }
 0x266   :  { %v504_v34 = vmax.f32 %v503_v13, 0.0 }
 0x268   :  { %676 = vmatmul.mubr.msk.f32.vlgmr.msra.gmra.mrb[2].mxu0 %vm511_vm1, %v504_v34 }
 0x33b   :  { %v581_v36 = vpop.f32.mrb[2].mxu0 }
 0x33c   :  { %v582_v37 = vadd.f32 %v581_v36, %v510_v35  ;;  %v677_v38 = vpop.f32.mrb[3].mxu0 }
 0x33e   :  { %586 = vst.msk [vmem:[%s957_s10] sm:$0xff] %vm585_vm10, %v582_v37 }

</bundles_post_ra>
